<compile_context>
chip_gen: v6e
topology: v6e:2x2x1
jax: 0.10.0
libtpu: 0.0.40
codegen_flags: <defaults>
</compile_context>

<pallas_src>
import functools

import jax
import jax.numpy as jnp
from jax.experimental import pallas as pl
from jax.experimental.pallas import tpu as pltpu


def _mlp_kernel(x_ref, w1_ref, b1_ref, w2_ref, b2_ref, wh_ref, bh_ref,
                out_ref, *, out_dim):
    x = x_ref[...]

    # fc1 + relu  (f32 accumulate, cast back to operand dtype for next matmul)
    h1 = jnp.maximum(
        jnp.dot(x, w1_ref[...], preferred_element_type=jnp.float32) + b1_ref[...],
        0.0).astype(w2_ref.dtype)

    # fc2 + relu
    h2 = jnp.maximum(
        jnp.dot(h1, w2_ref[...], preferred_element_type=jnp.float32) + b2_ref[...],
        0.0).astype(wh_ref.dtype)

    # fused heads: [mu_logits | sigma_logits] in one lane-dense matmul
    y = jnp.dot(h2, wh_ref[...], preferred_element_type=jnp.float32) + bh_ref[...]

    # identity on mu lanes, exp only on sigma lanes; single full-width store
    mu = y[:, :out_dim]
    sigma = jnp.exp(y[:, out_dim:])
    out_ref[...] = jnp.concatenate([mu, sigma], axis=1).astype(out_ref.dtype)


def _round_up(n, m):
    return ((n + m - 1) // m) * m


def pack_params(params, use_bf16=True):
    """One-time prep: fuse the two heads and cast operands (hoisted out of forward)."""
    op_dtype = jnp.bfloat16 if use_bf16 else jnp.float32
    w_heads = jnp.concatenate([params["wmu"], params["wsg"]], axis=1)
    b_heads = jnp.concatenate([params["bmu"], params["bsg"]], axis=1)
    return {
        "w1": params["w1"].astype(op_dtype),
        "b1": params["b1"].astype(jnp.float32),
        "w2": params["w2"].astype(op_dtype),
        "b2": params["b2"].astype(jnp.float32),
        "wh": w_heads.astype(op_dtype),
        "bh": b_heads.astype(jnp.float32),
    }


def my_network_forward(x, packed, *, block_b=4096):
    """x: (B, input_dim). packed: output of pack_params(). Returns (mu, sigma)."""
    B, input_dim = x.shape
    hidden = packed["w1"].shape[1]
    two_out = packed["wh"].shape[1]
    out_dim = two_out // 2

    op_dtype = packed["w1"].dtype
    xin = x.astype(op_dtype)

    # Batch tile: multiple of 8 sublanes, capped at ceil(B/2) so the grid has >= 2
    # steps whenever B > 8 (both v7x TensorCores get work); no input padding.
    tb = max(8, min(block_b, _round_up(pl.cdiv(B, 2), 8)))
    grid = (pl.cdiv(B, tb),)

    def const_spec(a):
        nd = a.ndim
        return pl.BlockSpec(a.shape, lambda i, _nd=nd: (0,) * _nd)

    flops = 2 * B * (input_dim * hidden + hidden * hidden + hidden * two_out)
    bytes_accessed = (
        xin.size * xin.dtype.itemsize
        + sum(int(packed[k].size) * packed[k].dtype.itemsize
              for k in ("w1", "b1", "w2", "b2", "wh", "bh"))
        + B * two_out * 4)

    out = pl.pallas_call(
        functools.partial(_mlp_kernel, out_dim=out_dim),
        out_shape=jax.ShapeDtypeStruct((B, two_out), jnp.float32),
        grid=grid,
        in_specs=[
            pl.BlockSpec((tb, input_dim), lambda i: (i, 0)),  # batch-tiled x
            const_spec(packed["w1"]), const_spec(packed["b1"]),  # VMEM-resident
            const_spec(packed["w2"]), const_spec(packed["b2"]),
            const_spec(packed["wh"]), const_spec(packed["bh"]),
        ],
        out_specs=pl.BlockSpec((tb, two_out), lambda i: (i, 0)),
        compiler_params=pltpu.CompilerParams(
            dimension_semantics=("parallel",)),
        cost_estimate=pl.CostEstimate(
            flops=int(flops),
            transcendentals=int(B * out_dim),
            bytes_accessed=int(bytes_accessed)),
    )(xin, packed["w1"], packed["b1"], packed["w2"], packed["b2"],
      packed["wh"], packed["bh"])

    mu = out[:, :out_dim]
    sigma = out[:, out_dim:]
    return mu, sigma


def init_params(key, input_dim, output_dim, hidden=64):
    """Deterministic init mimicking PyTorch nn.Linear (uniform +/- 1/sqrt(fan_in)).
    Weights stored as (in_features, out_features)."""
    def linear(k, fan_in, fan_out):
        kw, kb = jax.random.split(k)
        bound = 1.0 / jnp.sqrt(fan_in)
        w = jax.random.uniform(kw, (fan_in, fan_out), jnp.float32, -bound, bound)
        b = jax.random.uniform(kb, (1, fan_out), jnp.float32, -bound, bound)
        return w, b

    k1, k2, k3, k4 = jax.random.split(key, 4)
    w1, b1 = linear(k1, input_dim, hidden)
    w2, b2 = linear(k2, hidden, hidden)
    wmu, bmu = linear(k3, hidden, output_dim)
    wsg, bsg = linear(k4, hidden, output_dim)
    return {"w1": w1, "b1": b1, "w2": w2, "b2": b2,
            "wmu": wmu, "bmu": bmu, "wsg": wsg, "bsg": bsg}


def _reference(x, p):
    h1 = jnp.maximum(x @ p["w1"] + p["b1"], 0.0)
    h2 = jnp.maximum(h1 @ p["w2"] + p["b2"], 0.0)
    return h2 @ p["wmu"] + p["bmu"], jnp.exp(h2 @ p["wsg"] + p["bsg"])


if __name__ == "__main__":
    key = jax.random.PRNGKey(0)
    k_x, k_p = jax.random.split(key)

    batch, input_dim, output_dim = 8, 32, 16
    x = jax.random.normal(k_x, (batch, input_dim), jnp.float32)
    params = init_params(k_p, input_dim, output_dim)
    mu_ref, sigma_ref = _reference(x, params)

    # f32 path (strict 1e-5 tolerance against the reference)
    packed_f32 = pack_params(params, use_bf16=False)
    mu32, sigma32 = jax.block_until_ready(my_network_forward(x, packed_f32))
    assert mu32.shape == (batch, output_dim) and sigma32.shape == (batch, output_dim)
    assert jnp.allclose(mu32, mu_ref, atol=1e-5, rtol=1e-5)
    assert jnp.allclose(sigma32, sigma_ref, atol=1e-5, rtol=1e-5)
    assert jnp.all(sigma32 > 0)

    # default bf16 path (single-pass MXU matmuls); looser tolerance vs f32 reference
    packed_bf16 = pack_params(params, use_bf16=True)
    mu16, sigma16 = jax.block_until_ready(my_network_forward(x, packed_bf16))
    assert mu16.shape == (batch, output_dim) and sigma16.shape == (batch, output_dim)
    assert jnp.allclose(mu16, mu_ref, atol=3e-2, rtol=3e-2)
    assert jnp.allclose(sigma16, sigma_ref, atol=3e-2, rtol=3e-2)
    assert jnp.all(sigma16 > 0)

    print("KERNEL_OK")
</pallas_src>

<mosaic_0001>
module attributes {stable_mosaic.version = 11 : i64} {
  func.func @_mlp_kernel(%arg0: i32, %arg1: memref<8x32xf32, #tpu.memory_space<vmem>>, %arg2: memref<32x64xf32, #tpu.memory_space<vmem>>, %arg3: memref<1x64xf32, #tpu.memory_space<vmem>>, %arg4: memref<64x64xf32, #tpu.memory_space<vmem>>, %arg5: memref<1x64xf32, #tpu.memory_space<vmem>>, %arg6: memref<64x32xf32, #tpu.memory_space<vmem>>, %arg7: memref<1x32xf32, #tpu.memory_space<vmem>>, %arg8: memref<8x32xf32, #tpu.memory_space<vmem>>) attributes {dimension_semantics = [#tpu.dimension_semantics<parallel>], iteration_bounds = array<i64: 1>, scalar_prefetch = 0 : i64, scratch_operands = 0 : i64, tpu.core_type = #tpu.core_type<tc>, window_params = [{transform_indices = @transform_0, window_bounds = array<i64: 8, 32>}, {pipeline_mode = #tpu.pipeline_mode<synchronous>, transform_indices = @transform_1, window_bounds = array<i64: 32, 64>}, {pipeline_mode = #tpu.pipeline_mode<synchronous>, transform_indices = @transform_2, window_bounds = array<i64: 1, 64>}, {pipeline_mode = #tpu.pipeline_mode<synchronous>, transform_indices = @transform_3, window_bounds = array<i64: 64, 64>}, {pipeline_mode = #tpu.pipeline_mode<synchronous>, transform_indices = @transform_4, window_bounds = array<i64: 1, 64>}, {pipeline_mode = #tpu.pipeline_mode<synchronous>, transform_indices = @transform_5, window_bounds = array<i64: 64, 32>}, {pipeline_mode = #tpu.pipeline_mode<synchronous>, transform_indices = @transform_6, window_bounds = array<i64: 1, 32>}, {transform_indices = @transform_7, window_bounds = array<i64: 8, 32>}]} {
    %c0 = arith.constant 0 : index
    %c0_0 = arith.constant 0 : index
    %0 = vector.load %arg1[%c0, %c0_0] : memref<8x32xf32, #tpu.memory_space<vmem>>, vector<8x32xf32>
    %c0_1 = arith.constant 0 : index
    %c0_2 = arith.constant 0 : index
    %1 = vector.load %arg2[%c0_1, %c0_2] : memref<32x64xf32, #tpu.memory_space<vmem>>, vector<32x64xf32>
    %cst = arith.constant dense<0.000000e+00> : vector<8x64xf32>
    %2 = tpu.matmul %0, %1, %cst {dimension_numbers = #tpu.dot_dimension_numbers<[1], [0], [0], [1], [0, 0, 1, 1], [], []>} : vector<8x32xf32>, vector<32x64xf32>, vector<8x64xf32> -> vector<8x64xf32>
    %c0_3 = arith.constant 0 : index
    %c0_4 = arith.constant 0 : index
    %3 = vector.load %arg3[%c0_3, %c0_4] : memref<1x64xf32, #tpu.memory_space<vmem>>, vector<1x64xf32>
    %4 = vector.broadcast %3 : vector<1x64xf32> to vector<8x64xf32>
    %5 = arith.addf %2, %4 : vector<8x64xf32>
    %cst_5 = arith.constant 0.000000e+00 : f32
    %6 = vector.broadcast %cst_5 : f32 to vector<8x64xf32>
    %7 = arith.maximumf %5, %6 : vector<8x64xf32>
    %c0_6 = arith.constant 0 : index
    %c0_7 = arith.constant 0 : index
    %8 = vector.load %arg4[%c0_6, %c0_7] : memref<64x64xf32, #tpu.memory_space<vmem>>, vector<64x64xf32>
    %cst_8 = arith.constant dense<0.000000e+00> : vector<8x64xf32>
    %9 = tpu.matmul %7, %8, %cst_8 {dimension_numbers = #tpu.dot_dimension_numbers<[1], [0], [0], [1], [0, 0, 1, 1], [], []>} : vector<8x64xf32>, vector<64x64xf32>, vector<8x64xf32> -> vector<8x64xf32>
    %c0_9 = arith.constant 0 : index
    %c0_10 = arith.constant 0 : index
    %10 = vector.load %arg5[%c0_9, %c0_10] : memref<1x64xf32, #tpu.memory_space<vmem>>, vector<1x64xf32>
    %11 = vector.broadcast %10 : vector<1x64xf32> to vector<8x64xf32>
    %12 = arith.addf %9, %11 : vector<8x64xf32>
    %cst_11 = arith.constant 0.000000e+00 : f32
    %13 = vector.broadcast %cst_11 : f32 to vector<8x64xf32>
    %14 = arith.maximumf %12, %13 : vector<8x64xf32>
    %c0_12 = arith.constant 0 : index
    %c0_13 = arith.constant 0 : index
    %15 = vector.load %arg6[%c0_12, %c0_13] : memref<64x32xf32, #tpu.memory_space<vmem>>, vector<64x32xf32>
    %cst_14 = arith.constant dense<0.000000e+00> : vector<8x32xf32>
    %16 = tpu.matmul %14, %15, %cst_14 {dimension_numbers = #tpu.dot_dimension_numbers<[1], [0], [0], [1], [0, 0, 1, 1], [], []>} : vector<8x64xf32>, vector<64x32xf32>, vector<8x32xf32> -> vector<8x32xf32>
    %c0_15 = arith.constant 0 : index
    %c0_16 = arith.constant 0 : index
    %17 = vector.load %arg7[%c0_15, %c0_16] : memref<1x32xf32, #tpu.memory_space<vmem>>, vector<1x32xf32>
    %18 = vector.broadcast %17 : vector<1x32xf32> to vector<8x32xf32>
    %19 = arith.addf %16, %18 : vector<8x32xf32>
    %20 = vector.extract_strided_slice %19 {offsets = [0, 0], sizes = [8, 16], strides = [1, 1]} : vector<8x32xf32> to vector<8x16xf32>
    %21 = vector.extract_strided_slice %19 {offsets = [0, 16], sizes = [8, 16], strides = [1, 1]} : vector<8x32xf32> to vector<8x16xf32>
    %22 = math.exp %21 : vector<8x16xf32>
    %23 = tpu.concatenate %20, %22 in 1 : vector<8x16xf32>, vector<8x16xf32> -> vector<8x32xf32>
    %c0_17 = arith.constant 0 : index
    %c0_18 = arith.constant 0 : index
    %24 = vector.load %arg8[%c0_17, %c0_18] : memref<8x32xf32, #tpu.memory_space<vmem>>, vector<8x32xf32>
    tpu.vector_store %arg8[%c0_17, %c0_18], %23 {strides = array<i32>} : memref<8x32xf32, #tpu.memory_space<vmem>>, vector<8x32xf32>,
    return
  }
  func.func @transform_0(%arg0: i32) -> (i32, i32) {
    %c0_i32 = arith.constant 0 : i32
    %c0_i32_0 = arith.constant 0 : i32
    return %arg0, %c0_i32 : i32, i32
  }
  func.func @transform_1(%arg0: i32) -> (i32, i32) {
    %c0_i32 = arith.constant 0 : i32
    %c0_i32_0 = arith.constant 0 : i32
    %c0_i32_1 = arith.constant 0 : i32
    return %c0_i32, %c0_i32_0 : i32, i32
  }
  func.func @transform_2(%arg0: i32) -> (i32, i32) {
    %c0_i32 = arith.constant 0 : i32
    %c0_i32_0 = arith.constant 0 : i32
    %c0_i32_1 = arith.constant 0 : i32
    return %c0_i32, %c0_i32_0 : i32, i32
  }
  func.func @transform_3(%arg0: i32) -> (i32, i32) {
    %c0_i32 = arith.constant 0 : i32
    %c0_i32_0 = arith.constant 0 : i32
    %c0_i32_1 = arith.constant 0 : i32
    return %c0_i32, %c0_i32_0 : i32, i32
  }
  func.func @transform_4(%arg0: i32) -> (i32, i32) {
    %c0_i32 = arith.constant 0 : i32
    %c0_i32_0 = arith.constant 0 : i32
    %c0_i32_1 = arith.constant 0 : i32
    return %c0_i32, %c0_i32_0 : i32, i32
  }
  func.func @transform_5(%arg0: i32) -> (i32, i32) {
    %c0_i32 = arith.constant 0 : i32
    %c0_i32_0 = arith.constant 0 : i32
    %c0_i32_1 = arith.constant 0 : i32
    return %c0_i32, %c0_i32_0 : i32, i32
  }
  func.func @transform_6(%arg0: i32) -> (i32, i32) {
    %c0_i32 = arith.constant 0 : i32
    %c0_i32_0 = arith.constant 0 : i32
    %c0_i32_1 = arith.constant 0 : i32
    return %c0_i32, %c0_i32_0 : i32, i32
  }
  func.func @transform_7(%arg0: i32) -> (i32, i32) {
    %c0_i32 = arith.constant 0 : i32
    %c0_i32_0 = arith.constant 0 : i32
    return %arg0, %c0_i32 : i32, i32
  }
}

</mosaic_0001>

<bundles_post_ra>
// kernel: tpu_custom_call.1
= control target key start
LH: loop header
LB: loop body
LE: loop exit
PB: predicated region body
PF: predicated region fallthrough
CT: control target
= control target key end

     0   :  { %12 = vsyncpa [#allocation3], 0  ;;  %s601_s0 = inlined_call_operand.hbm [shape: f32[8,32], index: 0, kind: input, shape index: {}]   ;;  %s602_s1 = inlined_call_operand.vmem [shape: f32[32,64], index: 1, kind: input, shape index: {}]   ;;  %s603_s2 = inlined_call_operand.vmem [shape: f32[1,64], index: 2, kind: input, shape index: {}]   ;;  %s604_s3 = inlined_call_operand.vmem [shape: f32[64,64], index: 3, kind: input, shape index: {}]   ;;  %s605_s4 = inlined_call_operand.vmem [shape: f32[1,64], index: 4, kind: input, shape index: {}]   ;;  %s606_s5 = inlined_call_operand.vmem [shape: f32[64,32], index: 5, kind: input, shape index: {}]   ;;  %s607_s6 = inlined_call_operand.vmem [shape: f32[1,32], index: 6, kind: input, shape index: {}]   ;;  %s608_s7 = inlined_call_operand.hbm [shape: f32[8,32], index: 7, kind: output, shape index: {}]  }
   0x1   :  { %13 = vsyncpa [#allocation4], 0  ;;  %s452_s24 = smov [#allocation2]  }
   0x2   :  { %s20_s25 = sshll.u32 %s452_s24, 4  ;;  %s21_s25 = int_to_ptr.vmem [resolvable:$true] %s20_s25 }
   0x3   :  { %s416_s26 = scalar_lea.vmem %s21_s25, 128  ;;  %p421_p1 = scmp.lt.s32.totalorder %s21_s25, %s21_s25 }
   0x4   :  { %p417_p0 = scmp.ne.s32.totalorder %s21_s25, %s416_s26  ;;  %p422_p2 = scmp.lt.s32.totalorder %s416_s26, %s416_s26 }
   0x6   :  { %p423_p3 = por %p422_p2, %p421_p1 }
   0x8   :  { %p424_p4 = pnand %p423_p3, %p417_p0 }
   0xa   :  { %427 = shalt.err (!%p424_p4)
}
   0xb   :  { %23 = dma.hbm_to_vmem [thread:$0]  %s601_s0, 128, %s21_s25, [#allocation3]  }
   0xc   :  { %448 = dma.done.wait [#allocation3], 128  }
   0xd   :  { %449 = vsyncadd [#allocation3], 4294967168  ;;  %v453_v0 = vmov 0.0   ;;  %vm454_vm0 = vmmov 0   ;;  %v43_v1 = vld [vmem:[%s602_s1 + $0x18] sm:$0xff]  ;;  %v42_v2 = vld [vmem:[%s602_s1 + $0x10] sm:$0xff] }
   0xe   :  { %353 = vmatprep.subr.mxu0 %v453_v0  ;;  %361 = vmatprep.mubr.msk.f32.mxu0 %vm454_vm0, %v453_v0  ;;  %v133_v3 = vld [vmem:[%s604_s3 + $0x38] sm:$0xff]  ;;  %v41_v4 = vld [vmem:[%s602_s1 + $0x8] sm:$0xff]  ;;  %v132_v5 = vld [vmem:[%s604_s3 + $0x30] sm:$0xff]  ;;  %vm51_vm1 = vcmask 261120   ;;  %vm141_vm2 = vcmask 523264   ;;  %vm306_vm3 = vcmask 130048  }
   0xf   :  { %364 = vmatprep.subr.mxu1 %v453_v0  ;;  %380 = vmatprep.mubr.msk.f32.mxu1 %vm454_vm0, %v453_v0  ;;  %v131_v6 = vld [vmem:[%s604_s3 + $0x28] sm:$0xff]  ;;  %v40_v7 = vld [vmem:[%s602_s1] sm:$0xff]  ;;  %v129_v10 = vld [vmem:[%s604_s3 + $0x18] sm:$0xff] }
  0x10   :  { %354 = vmatpush3.msra.mxu0 %v43_v1  ;;  %365 = vmatpush3.msra.mxu1 %v133_v3  ;;  %v39_v8 = vld [vmem:[#allocation2] sm:$0xff]  ;;  %v128_v11 = vld [vmem:[%s604_s3 + $0x10] sm:$0xff]  ;;  %v127_v12 = vld [vmem:[%s604_s3 + $0x8] sm:$0xff] }
  0x11   :  { %355 = vmatprep.subr.mxu0 %v453_v0  ;;  %366 = vmatprep.subr.mxu1 %v453_v0  ;;  %v130_v9 = vld [vmem:[%s604_s3 + $0x20] sm:$0xff]  ;;  %v223_v14 = vld [vmem:[%s606_s5 + $0x38] sm:$0xff]  ;;  %v222_v15 = vld [vmem:[%s606_s5 + $0x30] sm:$0xff] }
  0x12   :  { %356 = vmatpush3.msra.mxu0 %v42_v2  ;;  %367 = vmatpush3.msra.mxu1 %v132_v5  ;;  %v126_v13 = vld [vmem:[%s604_s3] sm:$0xff]  ;;  %v221_v16 = vld [vmem:[%s606_s5 + $0x28] sm:$0xff]  ;;  %v219_v18 = vld [vmem:[%s606_s5 + $0x18] sm:$0xff] }
  0x13   :  { %357 = vmatprep.subr.mxu0 %v453_v0  ;;  %368 = vmatprep.subr.mxu1 %v453_v0  ;;  %v220_v17 = vld [vmem:[%s606_s5 + $0x20] sm:$0xff]  ;;  %v218_v24 = vld [vmem:[%s606_s5 + $0x10] sm:$0xff]  ;;  %v217_v25 = vld [vmem:[%s606_s5 + $0x8] sm:$0xff] }
  0x14   :  { %358 = vmatpush3.msra.mxu0 %v41_v4  ;;  %369 = vmatpush3.msra.mxu1 %v131_v6  ;;  %v324_v19 = vld [vmem:[%s603_s2] ss:$0 sm:$0xff] }
  0x15   :  { %359 = vmatprep.subr.mxu0 %v453_v0  ;;  %370 = vmatprep.subr.mxu1 %v453_v0  ;;  %v216_v26 = vld [vmem:[%s606_s5] sm:$0xff]  ;;  %s455_s5 = smov [#allocation5]  }
  0x16   :  { %360 = vmatpush3.msra.mxu0 %v40_v7  ;;  %371 = vmatpush3.msra.mxu1 %v130_v9  ;;  %v326_v27 = vld [vmem:[%s605_s4] ss:$0 sm:$0xff]  ;;  %s315_s23 = sshll.u32 %s455_s5, 4  ;;  %s316_s23 = int_to_ptr.vmem [resolvable:$true] %s315_s23 }
  0x17   :  { %362 = vmatmul.mubr.msk.f32.vlgmr.msra.gmra.mxu0 %vm51_vm1, %v39_v8  ;;  %372 = vmatprep.subr.mxu1 %v453_v0  ;;  %v328_v32 = vld [vmem:[%s607_s6] ss:$0 sm:$0xff]  ;;  %s428_s4 = scalar_lea.vmem %s316_s23, 128  ;;  %p433_p6 = scmp.lt.s32.totalorder %s316_s23, %s316_s23 }
  0x18   :  { %383 = vmatprep.subr.mxu0 %v453_v0  ;;  %373 = vmatpush3.msra.mxu1 %v129_v10  ;;  %p429_p5 = scmp.ne.s32.totalorder %s316_s23, %s428_s4  ;;  %p434_p7 = scmp.lt.s32.totalorder %s428_s4, %s428_s4 }
  0x19   :  { %399 = vmatprep.mubr.msk.f32.mxu0 %vm454_vm0, %v453_v0  ;;  %374 = vmatprep.subr.mxu1 %v453_v0 }
  0x1a   :  { %375 = vmatpush3.msra.mxu1 %v128_v11  ;;  %384 = vmatpush3.msra.mxu0 %v223_v14  ;;  %p435_p8 = por %p434_p7, %p433_p6 }
  0x1b   :  { %376 = vmatprep.subr.mxu1 %v453_v0  ;;  %385 = vmatprep.subr.mxu0 %v453_v0 }
  0x1c   :  { %377 = vmatpush3.msra.mxu1 %v127_v12  ;;  %386 = vmatpush3.msra.mxu0 %v222_v15  ;;  %p436_p9 = pnand %p435_p8, %p429_p5 }
  0x1d   :  { %378 = vmatprep.subr.mxu1 %v453_v0  ;;  %387 = vmatprep.subr.mxu0 %v453_v0 }
  0x1e   :  { %379 = vmatpush3.msra.mxu1 %v126_v13  ;;  %388 = vmatpush3.msra.mxu0 %v221_v16 }
  0x1f   :  { %389 = vmatprep.subr.mxu0 %v453_v0 }
  0x20   :  { %390 = vmatpush3.msra.mxu0 %v220_v17 }
  0x21   :  { %391 = vmatprep.subr.mxu0 %v453_v0 }
  0x22   :  { %392 = vmatpush3.msra.mxu0 %v219_v18 }
  0x23   :  { %393 = vmatprep.subr.mxu0 %v453_v0 }
  0x24   :  { %394 = vmatpush3.msra.mxu0 %v218_v24 }
  0x25   :  { %395 = vmatprep.subr.mxu0 %v453_v0 }
  0x26   :  { %396 = vmatpush3.msra.mxu0 %v217_v25 }
  0x27   :  { %397 = vmatprep.subr.mxu0 %v453_v0 }
  0x28   :  { %398 = vmatpush3.msra.mxu0 %v216_v26 }
  0xd7   :  { %v121_v20 = vpop.f32.mrf.mxu0 }
  0xd8   :  { %v122_v21 = vadd.f32 %v324_v19, %v121_v20 }
  0xd9   :  { %v363_v22 = vpop.f32.mrf.mxu0 }
  0xda   :  { %v125_v23 = vmax.f32 %v122_v21, 0.0 }
  0xdc   :  { %381 = vmatmul.mubr.msk.f32.vlgmr.msra.gmra.mxu1 %vm141_vm2, %v125_v23 }
 0x19c   :  { %v211_v28 = vpop.f32.mrf.mxu1 }
 0x19d   :  { %v212_v29 = vadd.f32 %v326_v27, %v211_v28 }
 0x19e   :  { %v382_v30 = vpop.f32.mrf.mxu1 }
 0x19f   :  { %v215_v31 = vmax.f32 %v212_v29, 0.0 }
 0x1a1   :  { %400 = vmatmul.mubr.msk.f32.vlgmr.msra.gmra.mxu0 %vm141_vm2, %v215_v31 }
 0x261   :  { %v300_v33 = vpop.f32.mrf.mxu0 }
 0x262   :  { %v301_v34 = vadd.f32 %v328_v32, %v300_v33 }
 0x263   :  { %v401_v35 = vpop.f32.mrf.mxu0 }
 0x264   :  { %v304_v36 = vmul.f32 1.442695, %v301_v34 }
 0x266   :  { %406 = vpow2.f32 %v304_v36 }
 0x273   :  { %v407_v37 = vpop.eup %406 }
 0x274   :  { %v307_v38 = vsel %vm306_vm3, %v301_v34, %v407_v37 }
 0x275   :  { %308 = vst.msk [vmem:[#allocation5] sm:$0xff] %vm51_vm1, %v307_v38 }
 0x276   :  { %439 = shalt.err (!%p436_p9)
}
 0x277   :  { %318 = dma.vmem_to_hbm [thread:$0]  %s316_s23, 128, %s608_s7, [#allocation4]  }
 0x278   :  { %450 = dma.done.wait [#allocation4], 128  }
 0x279   :  { %451 = vsyncadd [#allocation4], 4294967168 }
 0x27a   :  { %322 = vsyncpa [#allocation3], 1 }
 0x27b   :  { %323 = vsyncpa [#allocation4], 1 }

</bundles_post_ra>
